<compile_context>
chip_gen: v7x
topology: tpu7x:2x2x1
jax: 0.10.0
libtpu: 0.0.40
codegen_flags: <defaults>
</compile_context>

<pallas_src>
import functools
from math import sqrt

import jax
import jax.numpy as jnp
from jax import lax
from jax.experimental import pallas as pl
from jax.experimental.pallas import tpu as pltpu


def _cross_attn_kernel(x_ref, y_ref, m_ref, wq_ref, wk_ref, wv_ref, wo_ref,
                       bo_ref, out_ref, acc_ref, *, h_size):
    """One grid step = (batch b, query tile i, head h)."""
    h = pl.program_id(2)

    @pl.when(h == 0)
    def _init():
        acc_ref[...] = jnp.zeros_like(acc_ref)

    # bf16 MXU operands, f32 accumulation.
    x = x_ref[0].astype(jnp.bfloat16)          # (TQ, Dq)
    y = y_ref[0].astype(jnp.bfloat16)          # (Skv, Dkv)

    inv_norm = 1.0 / sqrt(float(h_size))       # PyTorch: sqrt(Q.size(-1)) = sqrt(h_size)

    # Per-head projections.  1/sqrt(hs) is folded into q: mathematically the
    # same as scaling the (TQ, Skv) scores, but touches an hs-wide tile only.
    q = (jnp.dot(x, wq_ref[0], preferred_element_type=jnp.float32)
         * inv_norm).astype(jnp.bfloat16)                                  # (TQ, hs)
    k = jnp.dot(y, wk_ref[0], preferred_element_type=jnp.float32).astype(jnp.bfloat16)  # (Skv, hs)
    v = jnp.dot(y, wv_ref[0], preferred_element_type=jnp.float32).astype(jnp.bfloat16)  # (Skv, hs)

    # scores = q @ k^T, without materializing the transpose.
    scores = lax.dot_general(q, k, (((1,), (1,)), ((), ())),
                             preferred_element_type=jnp.float32)           # (TQ, Skv)

    # masked_fill(mask == 0, -1e9): exp of any of these underflows to 0, so it
    # is equivalent to the reference's fill-before-scale ordering.
    keep = m_ref[0] != 0                                                   # int8, 1 = attend
    scores = jnp.where(keep, scores, jnp.float32(-1e9))

    # Numerically-stable softmax along the key axis; divide on the EUP.
    s_max = jnp.max(scores, axis=-1, keepdims=True)
    s_exp = jnp.exp(scores - s_max)
    s_sum = jnp.sum(s_exp, axis=-1, keepdims=True)
    probs = (s_exp * pl.reciprocal(s_sum, approx=True)).astype(jnp.bfloat16)

    ctx = jnp.dot(probs, v, preferred_element_type=jnp.float32).astype(jnp.bfloat16)  # (TQ, hs)

    # out = sum_h ctx_h @ Wo[h*hs:(h+1)*hs, :]  -- accumulate directly.
    acc_ref[...] += jnp.dot(ctx, wo_ref[0], preferred_element_type=jnp.float32)

    @pl.when(h == pl.num_programs(2) - 1)
    def _finalize():
        out_ref[0] = (acc_ref[...] + bo_ref[...]).astype(out_ref.dtype)


def _pick_block_q(sq):
    if sq <= 512:
        return sq
    for cand in (512, 256, 128):
        if sq % cand == 0:
            return cand
    return sq


def _vmem_bytes_estimate(block_q, skv, dq, dkv, hs):
    # Double-buffered pipeline blocks + scratch + rough working set.
    io = 2 * (block_q * dq * 4 + skv * dkv * 4 + block_q * skv * 1 + block_q * dq * 4)
    w = 2 * ((dq * hs + 2 * dkv * hs + hs * dq) * 2 + dq * 4)
    scratch = block_q * dq * 4
    work = 2 * block_q * skv * 4 + (block_q + 2 * skv) * hs * 4
    return io + w + scratch + work


def multi_cross_attention(x, y, attention_mask, wq, wk, wv, wo, bo, num_heads,
                          *, block_q=None):
    """x: (B,Sq,Dq), y: (B,Skv,Dkv), attention_mask: (B,Sq,Skv), 1=attend / 0=masked."""
    B, Sq, Dq = x.shape
    _, Skv, Dkv = y.shape
    A = wq.shape[1]
    assert A % num_heads == 0
    hs = A // num_heads

    # int8 mask: 4x less HBM traffic / VMEM than f32 (all-ones if None).
    if attention_mask is None:
        mask_i8 = jnp.ones((B, Sq, Skv), dtype=jnp.int8)
    else:
        mask_i8 = (attention_mask != 0).astype(jnp.int8)

    # Head-major, bf16 parameters (layout-only work done once outside the kernel).
    wq_h = wq.reshape(Dq, num_heads, hs).transpose(1, 0, 2).astype(jnp.bfloat16)
    wk_h = wk.reshape(Dkv, num_heads, hs).transpose(1, 0, 2).astype(jnp.bfloat16)
    wv_h = wv.reshape(Dkv, num_heads, hs).transpose(1, 0, 2).astype(jnp.bfloat16)
    wo_h = wo.reshape(num_heads, hs, Dq).astype(jnp.bfloat16)
    bo2d = bo.reshape(1, Dq).astype(jnp.float32)

    if block_q is None:
        block_q = _pick_block_q(Sq)
    assert Sq % block_q == 0
    n_q = Sq // block_q

    est = _vmem_bytes_estimate(block_q, Skv, Dq, Dkv, hs)
    # Only raise the scoped-VMEM limit when the working set needs it; cap at the
    # v7x physical 64 MiB so the same config runs on v5e / v6e / v7x.
    vmem_limit = min(int(est * 1.5), 64 << 20) if est > (16 << 20) else None

    kernel = functools.partial(_cross_attn_kernel, h_size=hs)

    return pl.pallas_call(
        kernel,
        out_shape=jax.ShapeDtypeStruct((B, Sq, Dq), x.dtype),
        grid=(B, n_q, num_heads),
        in_specs=[
            pl.BlockSpec((1, block_q, Dq), lambda b, i, h: (b, i, 0)),    # x
            pl.BlockSpec((1, Skv, Dkv), lambda b, i, h: (b, 0, 0)),       # y
            pl.BlockSpec((1, block_q, Skv), lambda b, i, h: (b, i, 0)),   # mask (int8)
            pl.BlockSpec((1, Dq, hs), lambda b, i, h: (h, 0, 0)),         # Wq[h]
            pl.BlockSpec((1, Dkv, hs), lambda b, i, h: (h, 0, 0)),        # Wk[h]
            pl.BlockSpec((1, Dkv, hs), lambda b, i, h: (h, 0, 0)),        # Wv[h]
            pl.BlockSpec((1, hs, Dq), lambda b, i, h: (h, 0, 0)),         # Wo[h]
            pl.BlockSpec((1, Dq), lambda b, i, h: (0, 0)),                # bias
        ],
        out_specs=pl.BlockSpec((1, block_q, Dq), lambda b, i, h: (b, i, 0)),
        scratch_shapes=[pltpu.VMEM((block_q, Dq), jnp.float32)],
        compiler_params=pltpu.CompilerParams(
            dimension_semantics=("parallel", "parallel", "arbitrary"),
            vmem_limit_bytes=vmem_limit,
        ),
    )(x, y, mask_i8, wq_h, wk_h, wv_h, wo_h, bo2d)


def _reference(x, y, mask, wq, wk, wv, wo, bo, num_heads):
    """Pure-JAX (f32) replica of the PyTorch forward for validation."""
    B, Sq, Dq = x.shape
    _, Skv, _ = y.shape
    A = wq.shape[1]
    hs = A // num_heads

    q = (x @ wq).reshape(B, Sq, num_heads, hs).transpose(0, 2, 1, 3)
    k = (y @ wk).reshape(B, Skv, num_heads, hs).transpose(0, 2, 1, 3)
    v = (y @ wv).reshape(B, Skv, num_heads, hs).transpose(0, 2, 1, 3)

    att = jnp.einsum("bhqd,bhkd->bhqk", q, k)
    att = jnp.where(mask[:, None, :, :] == 0.0, -1e9, att)
    att = jax.nn.softmax(att / sqrt(hs), axis=-1)
    ctx = jnp.einsum("bhqk,bhkd->bhqd", att, v)
    ctx = ctx.transpose(0, 2, 1, 3).reshape(B, Sq, A)
    return ctx @ wo + bo[None, None, :]


if __name__ == "__main__":
    # Small deterministic configuration consistent with the module.
    B, Sq, Skv = 2, 8, 8
    hidden_size_q = 32
    hidden_size_kv = 32
    all_head_size = 32
    head_num = 4

    key = jax.random.PRNGKey(0)
    kx, ky, km, kq, kk, kv, kwo, kbo = jax.random.split(key, 8)

    x = jax.random.normal(kx, (B, Sq, hidden_size_q), dtype=jnp.float32)
    y = jax.random.normal(ky, (B, Skv, hidden_size_kv), dtype=jnp.float32)

    # Mostly-attend mask (1 = attend, 0 = masked); keep key 0 always visible.
    mask = (jax.random.uniform(km, (B, Sq, Skv)) > 0.25).astype(jnp.float32)
    mask = mask.at[:, :, 0].set(1.0)

    # Deterministic synthetic parameters, stored as (in, out) so the kernel
    # computes x @ W (equivalent to PyTorch's x @ weight.T).
    scale = 0.1
    wq = scale * jax.random.normal(kq, (hidden_size_q, all_head_size), dtype=jnp.float32)
    wk = scale * jax.random.normal(kk, (hidden_size_kv, all_head_size), dtype=jnp.float32)
    wv = scale * jax.random.normal(kv, (hidden_size_kv, all_head_size), dtype=jnp.float32)
    wo = scale * jax.random.normal(kwo, (all_head_size, hidden_size_q), dtype=jnp.float32)
    bo = scale * jax.random.normal(kbo, (hidden_size_q,), dtype=jnp.float32)

    out = multi_cross_attention(x, y, mask, wq, wk, wv, wo, bo, head_num)
    out = jax.block_until_ready(out)

    ref = _reference(x, y, mask, wq, wk, wv, wo, bo, head_num)
    assert out.shape == (B, Sq, hidden_size_q)
    # bf16 MXU operands + approximate reciprocal -> relaxed tolerance vs f32 reference.
    assert jnp.allclose(out, ref, atol=3e-2, rtol=3e-2), (
        f"mismatch vs reference: max abs err {jnp.max(jnp.abs(out - ref))}")

    print("KERNEL_OK")
</pallas_src>

<mosaic_0001>
module attributes {stable_mosaic.version = 11 : i64} {
  func.func @_cross_attn_kernel(%arg0: i32, %arg1: i32, %arg2: i32, %arg3: memref<1x8x32xf32, #tpu.memory_space<vmem>>, %arg4: memref<1x8x32xf32, #tpu.memory_space<vmem>>, %arg5: memref<1x8x8xi8, #tpu.memory_space<vmem>>, %arg6: memref<1x32x8xbf16, #tpu.memory_space<vmem>>, %arg7: memref<1x32x8xbf16, #tpu.memory_space<vmem>>, %arg8: memref<1x32x8xbf16, #tpu.memory_space<vmem>>, %arg9: memref<1x8x32xbf16, #tpu.memory_space<vmem>>, %arg10: memref<1x32xf32, #tpu.memory_space<vmem>>, %arg11: memref<1x8x32xf32, #tpu.memory_space<vmem>>, %arg12: memref<8x32xf32, #tpu.memory_space<vmem>>) attributes {dimension_semantics = [#tpu.dimension_semantics<parallel>, #tpu.dimension_semantics<parallel>, #tpu.dimension_semantics<arbitrary>], iteration_bounds = array<i64: 2, 1, 4>, scalar_prefetch = 0 : i64, scratch_operands = 1 : i64, tpu.core_type = #tpu.core_type<tc>, window_params = [{transform_indices = @transform_0, window_bounds = array<i64: 1, 8, 32>}, {transform_indices = @transform_1, window_bounds = array<i64: 1, 8, 32>}, {transform_indices = @transform_2, window_bounds = array<i64: 1, 8, 8>}, {transform_indices = @transform_3, window_bounds = array<i64: 1, 32, 8>}, {transform_indices = @transform_4, window_bounds = array<i64: 1, 32, 8>}, {transform_indices = @transform_5, window_bounds = array<i64: 1, 32, 8>}, {transform_indices = @transform_6, window_bounds = array<i64: 1, 8, 32>}, {pipeline_mode = #tpu.pipeline_mode<synchronous>, transform_indices = @transform_7, window_bounds = array<i64: 1, 32>}, {transform_indices = @transform_8, window_bounds = array<i64: 1, 8, 32>}]} {
    %c0_i32 = arith.constant 0 : i32
    %0 = arith.cmpi eq, %arg2, %c0_i32 : i32
    %1 = arith.extui %0 : i1 to i32
    %c0_i32_0 = arith.constant 0 : i32
    %2 = arith.cmpi ne, %1, %c0_i32_0 : i32
    scf.if %2 {
      %cst_35 = arith.constant 0.000000e+00 : f32
      %52 = vector.broadcast %cst_35 : f32 to vector<8x32xf32>
      %c0_36 = arith.constant 0 : index
      %c0_37 = arith.constant 0 : index
      %53 = vector.load %arg12[%c0_36, %c0_37] : memref<8x32xf32, #tpu.memory_space<vmem>>, vector<8x32xf32>
      tpu.vector_store %arg12[%c0_36, %c0_37], %52 {strides = array<i32>} : memref<8x32xf32, #tpu.memory_space<vmem>>, vector<8x32xf32>,
    } else {
    }
    %c0 = arith.constant 0 : index
    %c0_1 = arith.constant 0 : index
    %c0_2 = arith.constant 0 : index
    %3 = vector.load %arg3[%c0, %c0_1, %c0_2] : memref<1x8x32xf32, #tpu.memory_space<vmem>>, vector<1x8x32xf32>
    %4 = vector.shape_cast %3 : vector<1x8x32xf32> to vector<8x32xf32>
    %5 = arith.truncf %4 : vector<8x32xf32> to vector<8x32xbf16>
    %c0_3 = arith.constant 0 : index
    %c0_4 = arith.constant 0 : index
    %c0_5 = arith.constant 0 : index
    %6 = vector.load %arg4[%c0_3, %c0_4, %c0_5] : memref<1x8x32xf32, #tpu.memory_space<vmem>>, vector<1x8x32xf32>
    %7 = vector.shape_cast %6 : vector<1x8x32xf32> to vector<8x32xf32>
    %8 = arith.truncf %7 : vector<8x32xf32> to vector<8x32xbf16>
    %c0_6 = arith.constant 0 : index
    %c0_7 = arith.constant 0 : index
    %c0_8 = arith.constant 0 : index
    %9 = vector.load %arg6[%c0_6, %c0_7, %c0_8] : memref<1x32x8xbf16, #tpu.memory_space<vmem>>, vector<1x32x8xbf16>
    %10 = vector.shape_cast %9 : vector<1x32x8xbf16> to vector<32x8xbf16>
    %cst = arith.constant dense<0.000000e+00> : vector<8x8xf32>
    %11 = tpu.matmul %5, %10, %cst {dimension_numbers = #tpu.dot_dimension_numbers<[1], [0], [0], [1], [0, 0, 1, 1], [], []>} : vector<8x32xbf16>, vector<32x8xbf16>, vector<8x8xf32> -> vector<8x8xf32>
    %cst_9 = arith.constant 0.353553385 : f32
    %12 = vector.broadcast %cst_9 : f32 to vector<8x8xf32>
    %13 = arith.mulf %11, %12 : vector<8x8xf32>
    %14 = arith.truncf %13 : vector<8x8xf32> to vector<8x8xbf16>
    %c0_10 = arith.constant 0 : index
    %c0_11 = arith.constant 0 : index
    %c0_12 = arith.constant 0 : index
    %15 = vector.load %arg7[%c0_10, %c0_11, %c0_12] : memref<1x32x8xbf16, #tpu.memory_space<vmem>>, vector<1x32x8xbf16>
    %16 = vector.shape_cast %15 : vector<1x32x8xbf16> to vector<32x8xbf16>
    %cst_13 = arith.constant dense<0.000000e+00> : vector<8x8xf32>
    %17 = tpu.matmul %8, %16, %cst_13 {dimension_numbers = #tpu.dot_dimension_numbers<[1], [0], [0], [1], [0, 0, 1, 1], [], []>} : vector<8x32xbf16>, vector<32x8xbf16>, vector<8x8xf32> -> vector<8x8xf32>
    %18 = arith.truncf %17 : vector<8x8xf32> to vector<8x8xbf16>
    %c0_14 = arith.constant 0 : index
    %c0_15 = arith.constant 0 : index
    %c0_16 = arith.constant 0 : index
    %19 = vector.load %arg8[%c0_14, %c0_15, %c0_16] : memref<1x32x8xbf16, #tpu.memory_space<vmem>>, vector<1x32x8xbf16>
    %20 = vector.shape_cast %19 : vector<1x32x8xbf16> to vector<32x8xbf16>
    %cst_17 = arith.constant dense<0.000000e+00> : vector<8x8xf32>
    %21 = tpu.matmul %8, %20, %cst_17 {dimension_numbers = #tpu.dot_dimension_numbers<[1], [0], [0], [1], [0, 0, 1, 1], [], []>} : vector<8x32xbf16>, vector<32x8xbf16>, vector<8x8xf32> -> vector<8x8xf32>
    %22 = arith.truncf %21 : vector<8x8xf32> to vector<8x8xbf16>
    %cst_18 = arith.constant dense<0.000000e+00> : vector<8x8xf32>
    %23 = tpu.matmul %14, %18, %cst_18 {dimension_numbers = #tpu.dot_dimension_numbers<[1], [1], [0], [0], [0, 0, 1, 0], [], []>} : vector<8x8xbf16>, vector<8x8xbf16>, vector<8x8xf32> -> vector<8x8xf32>
    %c0_19 = arith.constant 0 : index
    %c0_20 = arith.constant 0 : index
    %c0_21 = arith.constant 0 : index
    %24 = vector.load %arg5[%c0_19, %c0_20, %c0_21] : memref<1x8x8xi8, #tpu.memory_space<vmem>>, vector<1x8x8xi8>
    %25 = vector.shape_cast %24 : vector<1x8x8xi8> to vector<8x8xi8>
    %c0_i8 = arith.constant 0 : i8
    %26 = vector.broadcast %c0_i8 : i8 to vector<8x8xi8>
    %27 = arith.cmpi ne, %25, %26 : vector<8x8xi8>
    %cst_22 = arith.constant -1.000000e+09 : f32
    %28 = vector.broadcast %cst_22 : f32 to vector<8x8xf32>
    %29 = arith.select %27, %23, %28 : vector<8x8xi1>, vector<8x8xf32>
    %cst_23 = arith.constant dense<0xFF800000> : vector<8xf32>
    %30 = vector.multi_reduction <maximumf>, %29, %cst_23 [1] : vector<8x8xf32> to vector<8xf32>
    %31 = vector.shape_cast %30 : vector<8xf32> to vector<8x1xf32>
    %32 = vector.broadcast %31 : vector<8x1xf32> to vector<8x8xf32>
    %33 = arith.subf %29, %32 : vector<8x8xf32>
    %34 = math.exp %33 : vector<8x8xf32>
    %cst_24 = arith.constant dense<0.000000e+00> : vector<8xf32>
    %35 = vector.multi_reduction <add>, %34, %cst_24 [1] : vector<8x8xf32> to vector<8xf32>
    %36 = vector.shape_cast %35 : vector<8xf32> to vector<8x1xf32>
    %37 = tpu.reciprocal %36 {approx = true} : vector<8x1xf32> -> vector<8x1xf32>
    %38 = vector.broadcast %37 : vector<8x1xf32> to vector<8x8xf32>
    %39 = arith.mulf %34, %38 : vector<8x8xf32>
    %40 = arith.truncf %39 : vector<8x8xf32> to vector<8x8xbf16>
    %cst_25 = arith.constant dense<0.000000e+00> : vector<8x8xf32>
    %41 = tpu.matmul %40, %22, %cst_25 {dimension_numbers = #tpu.dot_dimension_numbers<[1], [0], [0], [1], [0, 0, 1, 1], [], []>} : vector<8x8xbf16>, vector<8x8xbf16>, vector<8x8xf32> -> vector<8x8xf32>
    %42 = arith.truncf %41 : vector<8x8xf32> to vector<8x8xbf16>
    %c0_26 = arith.constant 0 : index
    %c0_27 = arith.constant 0 : index
    %43 = vector.load %arg12[%c0_26, %c0_27] : memref<8x32xf32, #tpu.memory_space<vmem>>, vector<8x32xf32>
    %c0_28 = arith.constant 0 : index
    %c0_29 = arith.constant 0 : index
    %c0_30 = arith.constant 0 : index
    %44 = vector.load %arg9[%c0_28, %c0_29, %c0_30] : memref<1x8x32xbf16, #tpu.memory_space<vmem>>, vector<1x8x32xbf16>
    %45 = vector.shape_cast %44 : vector<1x8x32xbf16> to vector<8x32xbf16>
    %cst_31 = arith.constant dense<0.000000e+00> : vector<8x32xf32>
    %46 = tpu.matmul %42, %45, %cst_31 {dimension_numbers = #tpu.dot_dimension_numbers<[1], [0], [0], [1], [0, 0, 1, 1], [], []>} : vector<8x8xbf16>, vector<8x32xbf16>, vector<8x32xf32> -> vector<8x32xf32>
    %47 = arith.addf %43, %46 : vector<8x32xf32>
    %c0_32 = arith.constant 0 : index
    %c0_33 = arith.constant 0 : index
    %48 = vector.load %arg12[%c0_32, %c0_33] : memref<8x32xf32, #tpu.memory_space<vmem>>, vector<8x32xf32>
    tpu.vector_store %arg12[%c0_32, %c0_33], %47 {strides = array<i32>} : memref<8x32xf32, #tpu.memory_space<vmem>>, vector<8x32xf32>,
    %c3_i32 = arith.constant 3 : i32
    %49 = arith.cmpi eq, %arg2, %c3_i32 : i32
    %50 = arith.extui %49 : i1 to i32
    %c0_i32_34 = arith.constant 0 : i32
    %51 = arith.cmpi ne, %50, %c0_i32_34 : i32
    scf.if %51 {
      %c0_35 = arith.constant 0 : index
      %c0_36 = arith.constant 0 : index
      %52 = vector.load %arg12[%c0_35, %c0_36] : memref<8x32xf32, #tpu.memory_space<vmem>>, vector<8x32xf32>
      %c0_37 = arith.constant 0 : index
      %c0_38 = arith.constant 0 : index
      %53 = vector.load %arg10[%c0_37, %c0_38] : memref<1x32xf32, #tpu.memory_space<vmem>>, vector<1x32xf32>
      %54 = vector.broadcast %53 : vector<1x32xf32> to vector<8x32xf32>
      %55 = arith.addf %52, %54 : vector<8x32xf32>
      %c0_39 = arith.constant 0 : index
      %c0_40 = arith.constant 0 : index
      %c0_41 = arith.constant 0 : index
      %56 = vector.load %arg11[%c0_39, %c0_40, %c0_41] : memref<1x8x32xf32, #tpu.memory_space<vmem>>, vector<1x8x32xf32>
      %57 = vector.shape_cast %56 : vector<1x8x32xf32> to vector<8x32xf32>
      %58 = vector.shape_cast %55 : vector<8x32xf32> to vector<1x8x32xf32>
      tpu.vector_store %arg11[%c0_39, %c0_40, %c0_41], %58 {strides = array<i32>} : memref<1x8x32xf32, #tpu.memory_space<vmem>>, vector<1x8x32xf32>,
    } else {
    }
    return
  }
  func.func @transform_0(%arg0: i32, %arg1: i32, %arg2: i32) -> (i32, i32, i32) {
    %c0_i32 = arith.constant 0 : i32
    %c0_i32_0 = arith.constant 0 : i32
    return %arg0, %arg1, %c0_i32 : i32, i32, i32
  }
  func.func @transform_1(%arg0: i32, %arg1: i32, %arg2: i32) -> (i32, i32, i32) {
    %c0_i32 = arith.constant 0 : i32
    %c0_i32_0 = arith.constant 0 : i32
    %c0_i32_1 = arith.constant 0 : i32
    return %arg0, %c0_i32, %c0_i32_0 : i32, i32, i32
  }
  func.func @transform_2(%arg0: i32, %arg1: i32, %arg2: i32) -> (i32, i32, i32) {
    %c0_i32 = arith.constant 0 : i32
    %c0_i32_0 = arith.constant 0 : i32
    return %arg0, %arg1, %c0_i32 : i32, i32, i32
  }
  func.func @transform_3(%arg0: i32, %arg1: i32, %arg2: i32) -> (i32, i32, i32) {
    %c0_i32 = arith.constant 0 : i32
    %c0_i32_0 = arith.constant 0 : i32
    %c0_i32_1 = arith.constant 0 : i32
    return %arg2, %c0_i32, %c0_i32_0 : i32, i32, i32
  }
  func.func @transform_4(%arg0: i32, %arg1: i32, %arg2: i32) -> (i32, i32, i32) {
    %c0_i32 = arith.constant 0 : i32
    %c0_i32_0 = arith.constant 0 : i32
    %c0_i32_1 = arith.constant 0 : i32
    return %arg2, %c0_i32, %c0_i32_0 : i32, i32, i32
  }
  func.func @transform_5(%arg0: i32, %arg1: i32, %arg2: i32) -> (i32, i32, i32) {
    %c0_i32 = arith.constant 0 : i32
    %c0_i32_0 = arith.constant 0 : i32
    %c0_i32_1 = arith.constant 0 : i32
    return %arg2, %c0_i32, %c0_i32_0 : i32, i32, i32
  }
  func.func @transform_6(%arg0: i32, %arg1: i32, %arg2: i32) -> (i32, i32, i32) {
    %c0_i32 = arith.constant 0 : i32
    %c0_i32_0 = arith.constant 0 : i32
    %c0_i32_1 = arith.constant 0 : i32
    return %arg2, %c0_i32, %c0_i32_0 : i32, i32, i32
  }
  func.func @transform_7(%arg0: i32, %arg1: i32, %arg2: i32) -> (i32, i32) {
    %c0_i32 = arith.constant 0 : i32
    %c0_i32_0 = arith.constant 0 : i32
    %c0_i32_1 = arith.constant 0 : i32
    return %c0_i32, %c0_i32_0 : i32, i32
  }
  func.func @transform_8(%arg0: i32, %arg1: i32, %arg2: i32) -> (i32, i32, i32) {
    %c0_i32 = arith.constant 0 : i32
    %c0_i32_0 = arith.constant 0 : i32
    return %arg0, %arg1, %c0_i32 : i32, i32, i32
  }
}

</mosaic_0001>

<bundles_post_ra>
// kernel: tpu_custom_call.1
= control target key start
LH: loop header
LB: loop body
LE: loop exit
PB: predicated region body
PF: predicated region fallthrough
CT: control target
= control target key end

     0   :  { %s1509_s0 = inlined_call_operand.vmem [shape: f32[2,8,32], index: 0, kind: input, shape index: {}]   ;;  %s1510_s1 = inlined_call_operand.vmem [shape: f32[2,8,32], index: 1, kind: input, shape index: {}]   ;;  %s1511_s2 = inlined_call_operand.vmem [shape: s8[2,8,8], index: 2, kind: input, shape index: {}]   ;;  %s1512_s3 = inlined_call_operand.vmem [shape: bf16[4,32,8], index: 3, kind: input, shape index: {}]   ;;  %s1513_s4 = inlined_call_operand.vmem [shape: bf16[4,32,8], index: 4, kind: input, shape index: {}]   ;;  %s1514_s5 = inlined_call_operand.vmem [shape: bf16[4,32,8], index: 5, kind: input, shape index: {}]   ;;  %s1515_s6 = inlined_call_operand.vmem [shape: bf16[4,8,32], index: 6, kind: input, shape index: {}]   ;;  %s1516_s7 = inlined_call_operand.vmem [shape: f32[1,32], index: 7, kind: input, shape index: {}]   ;;  %s1517_s8 = inlined_call_operand.hbm [shape: f32[2,8,32], index: 8, kind: output, shape index: {}]  }
   0x1   :  { %1530 = sst [smem:[#allocation16_spill]] %s1509_s0 }
   0x2   :  { %1531 = sst [smem:[#allocation17_spill]] %s1517_s8 }
   0x3   :  { %13 = vsyncpa [#allocation4], 0 }
   0x4   :  { %15 = vsyncpa [#allocation4 + $0x1], 0  ;;  %s1317_s27 = smov 0   ;;  %s1319_s28 = smov 0  }
   0x5   :  { %s1321_s29 = smov 0   ;;  %s1323_s30 = smov 0  }
   0x6   :  { %s1325_s9 = smov 0   ;;  %s1327_s10 = smov 0  }
   0x7   :  { %s1329_s11 = smov 0   ;;  %s1331_s12 = smov 0  }
   0x8 LB: > { %1532 = sst [smem:[#allocation6_spill]] %s1237_s27  ;;  %s991_s13 = sadd.s32 4294967295, %s1265_s12   ;;  %s1265_s12 = sphi %s1331_s12, %s21_s12   ;;  %s1261_s11 = sphi %s1329_s11, %s1557_s11   ;;  %s1257_s10 = sphi %s1327_s10, %s1556_s10   ;;  %s1253_s9 = sphi %s1325_s9, %s1555_s9   ;;  %s1249_s30 = sphi %s1323_s30, %s1560_s30   ;;  %s1245_s29 = sphi %s1321_s29, %s1553_s29   ;;  %s1241_s28 = sphi %s1319_s28, %s1559_s28   ;;  %s1237_s27 = sphi %s1317_s27, %s1558_s27  }
   0x9   : > { %1533 = sst [smem:[#allocation7_spill]] %s1245_s29  ;;  %s992_s14 = sadd.s32 4294967294, %s1265_s12  }
   0xa   : > { %1534 = sst [smem:[#allocation8_spill]] %s1257_s10  ;;  %s33_s15 = sadd.s32 1, %s1257_s10 }
   0xb   : > { %1535 = sst [smem:[#allocation9_spill]] %s1261_s11  ;;  %p34_p0 = scmp.ge.s32.totalorder %s33_s15, 4 }
   0xc   : > { %1536 = sst [smem:[#allocation10_spill]] %s1265_s12  ;;  %s40_s16 = sadd.s32 1, %s1261_s11 }
   0xd   : > { %p266_p1 = scmp.ne.s32.totalorder %s1245_s29, %s1241_s28  ;;  %p267_p2 = scmp.eq.s32.totalorder %s991_s13, 7 }
   0xe   : > { %s1562_s15 = smov (%p34_p0, %s33_s15), 0  ;;  %s1564_s16 = smov (!%p34_p0, %s40_s16), %s1261_s11 }
   0xf   : > { %1537 = sst [smem:[#allocation11_spill]] %s1562_s15  ;;  %p1366_p3 = por %p267_p2, %p266_p1 }
  0x10   : > { %p272_p4 = scmp.ne.s32.totalorder %s1241_s28, %s1237_s27  ;;  %p42_p5 = scmp.ge.s32.totalorder %s1564_s16, 2 }
  0x11   : > { %s1538_s17 = scalar_select %p1366_p3, 1, 0 }
  0x12   : > { %p273_p6 = scmp.eq.s32.totalorder %s992_s14, 7  ;;  %p995_p7 = scmp.ge.s32.totalorder %s1265_s12, 1 }
  0x13   : > { %1539 = sst [smem:[#allocation12_spill]] %s1538_s17  ;;  %p352_p8 = scmp.lt.s32.totalorder %s1265_s12, 9 }
  0x14   : > { %s1566_s16 = smov (%p42_p5, %s1564_s16), 0  ;;  %p1376_p9 = por %p273_p6, %p272_p4 }
  0x15   : > { %1540 = sst [smem:[#allocation13_spill]] %s1566_s16  ;;  %p353_p10 = pnand %p995_p7, %p352_p8 }
  0x16   : > { %s1541_s18 = scalar_select %p1376_p9, 1, 0 }
  0x17   : > { %s251_s19 = ssub.s32 %s1261_s11, %s1566_s16  ;;  %s256_s20 = sadd.s32 1, %s1245_s29 }
  0x18   : > { %1542 = sst [smem:[#allocation14_spill]] %s1541_s18  ;;  %p254_p11 = scmp.eq.s32.totalorder %s251_s19, 0 }
  0x19   : > { %356 = sbr.rel (%p353_p10) target bundleno = 1272 (0x4f8), region = 52  ;;  %s1521_s22 = sand.u32 (!%p353_p10), 1, %s1241_s28  }
  0x1a   : > { %s1384_s21 = scalar_select %p254_p11, %s1245_s29, %s256_s20  }
  0x1b   : > { %p418_p12 = scmp.lt.s32.totalorder (!%p353_p10), %s1253_s9, 1  ;;  %s1390_s23 = sshll.u32 (!%p353_p10), %s1521_s22, 3 }
  0x1c   : > { %1543 = sst [smem:[#allocation15_spill]] %s1384_s21  ;;  %p436_p13 = scmp.lt.s32.totalorder (!%p353_p10), %s1249_s30, 3 }
  0x1d   : > { %s1544_s0 = sld [smem:[#allocation16_spill]] (!%p353_p10)  ;;  %s417_s21 = scalar_lea.vmem (!%p353_p10), [#allocation3], %s1390_s23 }
  0x1e   : > { %p1007_p0 = scmp.ne.s32.totalorder (!%p353_p10), %s1249_s30, 0 }
  0x20   : > { %s419_s24 = scalar_select %p418_p12, %s1253_s9, 1 }
  0x21   : > { %s437_s25 = scalar_select %p436_p13, %s1249_s30, 3 }
  0x22   : > { %s997_s26 = sshll.u32 %s419_s24, 3  ;;  %s999_s13 = sshll.u32 %s419_s24, 1  ;;  %vm462_vm0 = vcmask (!%p1007_p0), 261120   ;;  %v1267_v0 = vmov (!%p1007_p0), 0.0  }
  0x23   : > { %s1398_s20 = scalar_lea.vmem %s1544_s0, %s997_s26  ;;  %s428_s11 = scalar_lea.vmem %s1510_s1, %s997_s26  ;;  %463 = vst.msk [vmem:[#allocation2] sm:$0xff] (!%p1007_p0), %vm462_vm0, %v1267_v0 }
  0x24   : > { %s1406_s22 = scalar_lea.vmem %s1511_s2, %s999_s13  ;;  %s1026_s29 = sshll.u32 %s437_s25, 4 }
  0x25   : > { %s440_s12 = scalar_lea.vmem %s1512_s3, %s1026_s29  ;;  %s445_s14 = scalar_lea.vmem %s1513_s4, %s1026_s29 }
  0x26   : > { %s1417_s17 = scalar_lea.vmem %s1514_s5, %s1026_s29  ;;  %s1006_s15 = sshll.u32 %s437_s25, 2 }
  0x27   : > { %s1422_s10 = scalar_lea.vmem %s1515_s6, %s1006_s15  ;;  %461 = sbr.rel (%p1007_p0) target bundleno = 46 (0x2e), region = 56 }
  0x2e PF: > { %v1161_v1 = vld [vmem:[%s445_s14] sm:$0xff]   ;;  %v1268_v2 = vmov 0.0   ;;  %v1163_v4 = vld [vmem:[%s445_s14 + $0x8] sm:$0xff]   ;;  %vm1269_vm1 = vmmov 0   ;;  %vm484_vm2 = vcmask 261120   ;;  %vm647_vm3 = vcmask 64512  }
  0x2f   : > { %1052 = vmatprep.subr.bf16.mxu1 %v1268_v2  ;;  %1044 = vmatprep.subr.bf16.mxu0 %v1268_v2  ;;  %v1162_v3 = vld [vmem:[%s440_s12] sm:$0xff]   ;;  %v1164_v6 = vld [vmem:[%s440_s12 + $0x8] sm:$0xff]   ;;  %v1270_v25 = vmov 0   ;;  %vm715_vm6 = vcmask 1043456   ;;  %p1020_p1 = scmp.ne.s32.totalorder %s1249_s30, 3 }
  0x30   : > { %1053 = vmatpush3.bf16.msra.mxu1 %v1161_v1  ;;  %1056 = vmatprep.mubr.msk.bf16.mxu1 %vm1269_vm1, %v1268_v2  ;;  %v466_v5 = vld [vmem:[%s428_s11] sm:$0xff]  ;;  %v1166_v23 = vld [vmem:[%s1417_s17 + $0x8] sm:$0xff]  }
  0x31   : > { %1054 = vmatprep.subr.bf16.mxu1 %v1268_v2  ;;  %1045 = vmatpush3.bf16.msra.mxu0 %v1162_v3  ;;  %v464_v7 = vld [vmem:[%s1398_s20] sm:$0xff]  ;;  %v467_v8 = vpack.c.bf16 %v466_v5, %v466_v5 }
  0x32   : > { %1046 = vmatprep.subr.bf16.mxu0 %v1268_v2  ;;  %1048 = vmatprep.mubr.msk.bf16.mxu0 %vm1269_vm1, %v1268_v2  ;;  %v465_v9 = vpack.c.bf16 %v464_v7, %v464_v7  ;;  %v1165_v22 = vld [vmem:[%s1417_s17] sm:$0xff]  }
  0x33   : > { %v694_v24 = vld [vmem:[%s1406_s22] sm:$0x3] }
  0x34   : > { %1055 = vmatpush3.bf16.msra.mxu1 %v1163_v4  ;;  %vm695_vm4 = vnez %v694_v24  ;;  %v761_v45 = vld [vmem:[%s1422_s10] sm:$0xf] }
  0x35   : > { %1047 = vmatpush3.bf16.msra.mxu0 %v1164_v6  ;;  %1068 = vmatprep.subr.bf16.mxu1 %v1268_v2  ;;  %v696_v26 = vsel %vm695_vm4, 16843009, %v1270_v25  ;;  %v766_v46 = vsel %vm715_vm6, %v761_v45, 0  ;;  %v760_v56 = vld [vmem:[#allocation2] sm:$0xff] }
  0x36   : > { %1060 = vmatprep.subr.bf16.mxu0 %v1268_v2  ;;  %v697_v27 = vunpack.c.0.s8 %v696_v26  ;;  %v1021_v63 = vld [vmem:[%s1516_s7] ss:$0 sm:$0xff] (!%p1020_p1) }
  0x37   : > { %1057 = vmatmul.mubr.msk.bf16.vlgmr.msra.gmra.mrb[0].mxu1 %vm484_vm2, %v467_v8 }
  0x38   : > { %1049 = vmatmul.mubr.msk.bf16.vlgmr.msra.gmra.mrb[0].mxu0 %vm484_vm2, %v465_v9  ;;  %1070 = vmatprep.mubr.msk.bf16.mxu1 %vm1269_vm1, %v1268_v2  ;;  %vm698_vm5 = vcmp.ne.s32.totalorder %v697_v27, 0 }
  0x39   : > { %1064 = vmatprep.mubr.msk.bf16.mxu0 %vm1269_vm1, %v1268_v2  ;;  %1061 = vmatpush3.bf16.msra.mxu0 %v1165_v22 }
  0x3a   : > { %1062 = vmatprep.subr.bf16.mxu0 %v1268_v2 }
  0x3d   : > { %1063 = vmatpush3.bf16.msra.mxu0 %v1166_v23 }
  0x3e   : > { %1074 = vmatprep.subr.bf16.mxu0 %v1268_v2 }
  0x40   : > { %1065 = vmatmul.mubr.msk.bf16.vlgmr.msra.gmra.mrb[4].mxu0 %vm484_vm2, %v467_v8 }
  0x41   : > { %1076 = vmatprep.mubr.msk.bf16.mxu0 %vm1269_vm1, %v1268_v2 }
 0x10a   : > { %v583_v10 = vpop.f32.mrb[0].mxu1 }
 0x10b   : > { %v589_v11 = vpack.c.bf16 %v583_v10, %v583_v10  ;;  %v1058_v12 = vpop.f32.mrb[1].mxu1  ;;  %v522_v13 = vpop.f32.mrb[0].mxu0 }
 0x10c   : > { %v586_v14 = vpop.f32.mrb[2].mxu1  ;;  %v1050_v15 = vpop.f32.mrb[1].mxu0  ;;  %v528_v18 = vmul.f32 0.35355338, %v522_v13 }
 0x10d   : > { %v652_v16 = vsel %vm647_vm3, %v589_v11, 0  ;;  %v1059_v17 = vpop.f32.mrb[3].mxu1  ;;  %v525_v19 = vpop.f32.mrb[2].mxu0 }
 0x10e   : > { %1069 = vmatpush3.bf16.xpose.msra.mxu1 %v652_v16  ;;  %v1051_v20 = vpop.f32.mrb[3].mxu0  ;;  %v529_v21 = vpack.c.bf16 %v528_v18, %v528_v18 }
 0x10f   : > { %1080 = vmatprep.subr.bf16.mxu1 %v1268_v2 }
 0x113   : > { %v640_v39 = vpop.f32.mrb[4].mxu0 }
 0x114   : > { %v1066_v40 = vpop.f32.mrb[5].mxu0  ;;  %v646_v43 = vpack.c.bf16 %v640_v39, %v640_v39 }
 0x115   : > { %1071 = vmatmul.mubr.msk.bf16.vlgmr.msra.gmra.mrb[4].mxu1 %vm647_vm3, %v529_v21  ;;  %v643_v41 = vpop.f32.mrb[6].mxu0 }
 0x116   : > { %1082 = vmatprep.mubr.msk.bf16.mxu1 %vm1269_vm1, %v1268_v2  ;;  %v1067_v42 = vpop.f32.mrb[7].mxu0  ;;  %v717_v44 = vsel %vm715_vm6, %v646_v43, 0  ;;  %1081 = vmatpush3.bf16.msra.mxu1 %v766_v46 }
 0x117   : > { %1075 = vmatpush3.bf16.msra.mxu0 %v717_v44 }
 0x1e8   : > { %v688_v28 = vpop.f32.mrb[4].mxu1 }
 0x1e9   : > { %v699_v29 = vsel %vm698_vm5, %v688_v28, -1e+09  ;;  %v1072_v30 = vpop.f32.mrb[5].mxu1 }
 0x1ea   : > { %v691_v31 = vpop.f32.mrb[6].mxu1  ;;  %v700_v32 = vsel %vm647_vm3, %v699_v29, -inf }
 0x1eb   : > { %701 = vmax.xlane.f32.xlu0 %v700_v32  ;;  %v1073_v33 = vpop.f32.mrb[7].mxu1 }
 0x278   : > { %v702_v34 = vpop.xlane.xlu0 %701 }
 0x279   : > { %v703_v35 = vsub.f32 %v699_v29, %v702_v34 }
 0x27b   : > { %v704_v36 = vmul.f32 1.442695, %v703_v35 }
 0x27d   : > { %1167 = vpow2.f32 %v704_v36 }
 0x287   : > { %v1168_v37 = vpop.eup %1167 }
 0x288   : > { %v706_v38 = vsel %vm647_vm3, %v1168_v37, 0.0 }
 0x289   : > { %707 = vadd.xlane.f32.xlu0 %v706_v38 }
 0x316   : > { %v708_v47 = vpop.xlane.xlu0 %707 }
 0x317   : > { %1169 = vrcp.f32 %v708_v47 }
 0x321   : > { %v1170_v48 = vpop.eup %1169 }
 0x322   : > { %v710_v49 = vmul.f32 %v1170_v48, %v1168_v37 }
 0x324   : > { %v711_v50 = vpack.c.bf16 %v710_v49, %v710_v49 }
 0x326   : > { %1077 = vmatmul.mubr.msk.bf16.vlgmr.msra.gmra.mrb[8].mxu0 %vm647_vm3, %v711_v50 }
 0x3f9   : > { %v753_v51 = vpop.f32.mrb[8].mxu0 }
 0x3fa   : > { %v759_v52 = vpack.c.bf16 %v753_v51, %v753_v51  ;;  %v1078_v53 = vpop.f32.mrb[9].mxu0 }
 0x3fb   : > { %v756_v54 = vpop.f32.mrb[10].mxu0 }
 0x3fc   : > { %v1079_v55 = vpop.f32.mrb[11].mxu0  ;;  %1083 = vmatmul.mubr.msk.bf16.vlgmr.msra.gmra.mrb[8].mxu1 %vm647_vm3, %v759_v52 }
 0x4cc   : > { %813 = sbr.rel (%p1020_p1) target bundleno = 1245 (0x4dd), region = 60 }
 0x4cf   : > { %v802_v57 = vpop.f32.mrb[8].mxu1 }
 0x4d0   : > { %v808_v58 = vadd.f32 %v802_v57, %v760_v56  ;;  %v1084_v59 = vpop.f32.mrb[9].mxu1 }
 0x4d1   : > { %v805_v60 = vpop.f32.mrb[10].mxu1 }
 0x4d2   : > { %809 = vst.msk [vmem:[#allocation2] sm:$0xff] %vm484_vm2, %v808_v58  ;;  %v1085_v61 = vpop.f32.mrb[11].mxu1 }
 0x4d9   : > { %v814_v62 = vld [vmem:[#allocation2] sm:$0xff] }
 0x4da   : > { %v822_v0 = vadd.f32 %v1021_v63, %v814_v62 }
 0x4dc   : > { %823 = vst.msk [vmem:[%s417_s21] sm:$0xff] %vm484_vm2, %v822_v0 }
 0x4dd PF: > { %s1023_s29 = sshll.u32 %s1253_s9, 7  ;;  %s1546_s30 = sld [smem:[#allocation17_spill]] }
 0x4de   : > { %s839_s22 = sshll.u32 %s417_s21, 4  ;;  %s1548_s25 = sand.u32 1, %s1241_s28   ;;  %s840_s22 = int_to_ptr.vmem [resolvable:$true] %s839_s22 }
 0x4df   : > { %s825_s13 = scalar_lea.sflag [#allocation4], %s1548_s25  ;;  %s1171_s20 = scalar_lea.vmem %s840_s22, 128 }
 0x4e0   : > { %p1172_p2 = scmp.ne.s32.totalorder %s840_s22, %s1171_s20  ;;  %s1271_s24 = smov [#allocation3]  }
 0x4e1   : > { %s1175_s14 = sshll.u32 %s1271_s24, 4  ;;  %s1176_s14 = int_to_ptr.vmem [resolvable:$false] %s1175_s14 }
 0x4e2   : > { %p1173_p4 = pnand %p1172_p2, %p1366_p3  ;;  %s1177_s19 = scalar_lea.vmem %s1176_s14, 256 }
 0x4e3   : > { %s1547_s17 = smov %s1546_s30  ;;  %s1458_s18 = scalar_lea.hbm %s1546_s30, %s1023_s29 }
 0x4e4   : > { %p1174_p5 = pneg %p1173_p4  ;;  %p1178_p6 = scmp.lt.s32.totalorder %s840_s22, %s1176_s14 }
 0x4e5   : > { %p1179_p7 = scmp.lt.s32.totalorder %s1177_s19, %s1171_s20 }
 0x4e7   : > { %p1180_p8 = por %p1179_p7, %p1178_p6 }
 0x4e9   : > { %p1181_p10 = pnand %p1180_p8, %p1174_p5 }
 0x4eb   : > { %1184 = shalt.err (!%p1181_p10)
}
 0x4ec   : > { %s1185_s9 = scalar_lea.hbm %s1458_s18, 128  ;;  %s1189_s16 = scalar_lea.hbm %s1547_s17, 256 }
 0x4ed   : > { %p1186_p11 = scmp.ne.s32.totalorder %s1458_s18, %s1185_s9  ;;  %p1190_p0 = scmp.lt.u32.totalorder %s1458_s18, %s1547_s17 }
 0x4ee   : > { %p1191_p1 = scmp.lt.u32.totalorder %s1189_s16, %s1185_s9  ;;  %p1193_p4 = scmp.lt.u32.totalorder %s1185_s9, %s1458_s18 }
 0x4ef   : > { %p1187_p12 = pnand %p1186_p11, %p1366_p3 }
 0x4f0   : > { %p1192_p2 = por %p1191_p1, %p1190_p0 }
 0x4f1   : > { %p1188_p13 = pneg %p1187_p12 }
 0x4f2   : > { %p1194_p5 = por %p1193_p4, %p1192_p2 }
 0x4f4   : > { %p1195_p6 = pnand %p1194_p5, %p1188_p13 }
 0x4f6   : > { %1198 = shalt.err (!%p1195_p6)
}
 0x4f7   : > { %1086 = dma.vmem_to_hbm [thread:$0]  (%p1366_p3), %s840_s22, 128, %s1458_s18, %s825_s13  }
 0x4f8 PF: > { %s1549_s21 = sld [smem:[#allocation10_spill]]  ;;  %s1550_s0 = sld [smem:[#allocation6_spill]] }
 0x4fe   : > { %p1092_p7 = scmp.ge.s32.totalorder %s1549_s21, 2  ;;  %s851_s29 = sand.u32 1, %s1550_s0  }
 0x4ff   : > { %s852_s11 = scalar_lea.sflag [#allocation4], %s851_s29 }
 0x500   : > { %p1089_p8 = pnand %p1092_p7, %p1376_p9 }
 0x502   : > { %1232 = dma.done.wait (!%p1089_p8), %s852_s11, 128  }
 0x503   : > { %1234 = vsyncadd (!%p1089_p8), %s852_s11, 4294967168  ;;  %s21_s12 = sadd.s32 1, %s1549_s21   ;;  %s1552_s30 = sld [smem:[#allocation7_spill]] }
 0x504   : > { %p18_p10 = scmp.ge.s32.totalorder %s21_s12, 10   ;;  %s1553_s29 = sld [smem:[#allocation15_spill]] }
 0x505   : > { %s1554_s25 = sld [smem:[#allocation8_spill]]  ;;  %s1555_s9 = sld [smem:[#allocation9_spill]] }
 0x506   : > { %s1556_s10 = sld [smem:[#allocation11_spill]]  ;;  %s1557_s11 = sld [smem:[#allocation13_spill]] }
 0x507   : > { %s1558_s27 = smov %s1241_s28  ;;  %20 = sbr.rel (!%p18_p10) target bundleno = 8 (0x8), region = 113 }
 0x509   : > { %s1559_s28 = smov %s1552_s30 }
 0x50b   : > { %s1560_s30 = smov %s1554_s25 }
 0x50e   :  { %857 = vsyncpa [#allocation4], 1 }
 0x50f   :  { %859 = vsyncpa [#allocation4 + $0x1], 1 }

</bundles_post_ra>
